<compile_context>
chip_gen: v6e
topology: v6e:2x2x1
jax: 0.10.0
libtpu: 0.0.40
codegen_flags: <defaults>
</compile_context>

<pallas_src>
import functools

import numpy as np
import jax
import jax.numpy as jnp
from jax.experimental import pallas as pl
from jax.experimental.pallas import tpu as pltpu


def _round_up(x, m):
    return -(-x // m) * m


def _finalize_stats(sums, count, eps=1e-5):
    """sums: (2, C) rows = [sum, sum_of_squares] -> (mean, rsqrt(var+eps)), biased var."""
    mean = sums[0:1] / count
    var = jnp.maximum(sums[1:2] / count - mean * mean, 0.0)
    return mean, jax.lax.rsqrt(var + eps)


# --------------------------------------------------------------------------
# BatchNorm statistics for BN1: row-tiled accumulating reduction kernel
# --------------------------------------------------------------------------
def _bn_stats_kernel(x_ref, s_ref):
    @pl.when(pl.program_id(0) == 0)
    def _():
        s_ref[...] = jnp.zeros_like(s_ref)

    x = x_ref[...]
    s_ref[...] += jnp.concatenate(
        [jnp.sum(x, axis=0, keepdims=True),
         jnp.sum(x * x, axis=0, keepdims=True)], axis=0)


def bn_stats(x2d, eps=1e-5):
    """x2d: (M, C) f32 -> (mean, rsqrt(var+eps)) each (1, C) f32 (biased variance)."""
    M, C = x2d.shape
    tm = M
    for cand in (1024, 512, 256, 128, 64, 32, 16, 8):
        if M % cand == 0:
            tm = cand
            break
    sums = pl.pallas_call(
        _bn_stats_kernel,
        out_shape=jax.ShapeDtypeStruct((2, C), jnp.float32),
        grid=(M // tm,),
        in_specs=[pl.BlockSpec((tm, C), lambda i: (i, 0))],
        out_specs=pl.BlockSpec((2, C), lambda i: (0, 0)),
        compiler_params=pltpu.CompilerParams(dimension_semantics=("arbitrary",)),
    )(x2d)
    return _finalize_stats(sums, M, eps)


# --------------------------------------------------------------------------
# Fused BN-apply + ReLU + 3x3 conv
#   (+ optional fused 1x1 shortcut, + optional residual add,
#    + optional spatially-padded output, + optional next-BN partial stats)
# --------------------------------------------------------------------------
def _fused_conv_kernel(*refs, stride, Ho, Wo, Hin, Win,
                       has_sc, has_res, pad_out, emit_stats):
    mean_ref, inv_ref, x_ref, w_ref = refs[0], refs[1], refs[2], refs[3]
    i = 4
    wsc_ref = res_ref = None
    if has_sc:
        wsc_ref = refs[i]; i += 1
    if has_res:
        res_ref = refs[i]; i += 1
    out_ref = refs[i]; i += 1
    sc_ref = None
    if has_sc:
        sc_ref = refs[i]; i += 1
    stats_ref = refs[i] if emit_stats else None

    s = stride
    Hph, Wph, C = x_ref.shape[2], x_ref.shape[3], x_ref.shape[4]
    Cout = w_ref.shape[2]

    mean = mean_ref[...].reshape(1, 1, C)
    inv = inv_ref[...].reshape(1, 1, C)

    hh = jax.lax.broadcasted_iota(jnp.int32, (Hph, Wph, C), 0)
    ww = jax.lax.broadcasted_iota(jnp.int32, (Hph, Wph, C), 1)

    # BN-normalize + ReLU each phase image (f32 math); zero the conv padding ring
    # (and phase over-pad) so it behaves like PyTorch's zero-padding of relu(bn(x)).
    ys = []
    for p in range(s * s):
        ph, pw = p // s, p % s
        xp = x_ref[0, p]                                   # (Hph, Wph, C) f32
        y = jnp.maximum((xp - mean) * inv, 0.0)
        lo_h = 1 if ph == 0 else 0
        hi_h = (Hin - ph) // s
        lo_w = 1 if pw == 0 else 0
        hi_w = (Win - pw) // s
        valid = (hh >= lo_h) & (hh <= hi_h) & (ww >= lo_w) & (ww <= hi_w)
        ys.append(jnp.where(valid, y, 0.0))

    def tap2d(kh, kw):
        p = (kh % s) * s + (kw % s)
        oh, ow = kh // s, kw // s
        t = jax.lax.slice(ys[p], (oh, ow, 0), (oh + Ho, ow + Wo, C))
        return t.reshape(Ho * Wo, C).astype(jnp.bfloat16)   # bf16 at matmul boundary

    acc = jnp.zeros((Ho * Wo, Cout), jnp.float32)
    for kh in range(3):
        for kw in range(3):
            acc = acc + jnp.dot(tap2d(kh, kw), w_ref[kh * 3 + kw],
                                preferred_element_type=jnp.float32)

    if emit_stats:
        # Per-batch partial stats of the conv output (pre-residual) for the next BN.
        stats_ref[0, 0:1, :] = jnp.sum(acc, axis=0, keepdims=True)
        stats_ref[0, 1:2, :] = jnp.sum(acc * acc, axis=0, keepdims=True)

    if has_res:
        acc = acc + res_ref[0].reshape(Ho * Wo, Cout)
    o = acc.reshape(Ho, Wo, Cout)

    if pad_out:
        # Emit the output with its conv-padding halo ring pre-zeroed so the next conv
        # kernel can consume it directly (no extra pad/copy pass over HBM).
        out_ref[...] = jnp.zeros(out_ref.shape, out_ref.dtype)
        out_ref[0, 1:Ho + 1, 1:Wo + 1, :] = o
    else:
        out_ref[0] = o

    if has_sc:
        sc = jnp.dot(tap2d(1, 1), wsc_ref[...], preferred_element_type=jnp.float32)
        sc_ref[0] = sc.reshape(Ho, Wo, Cout)


def fused_conv(phases, w9, mean, inv, *, stride, Ho, Wo, Hin, Win,
               wsc=None, residual=None, pad_out=False, emit_stats=False):
    """phases: (N, s*s, Hph, Wph, C) f32; w9: (9, C, Cout) bf16. Returns a tuple."""
    N, s2, Hph, Wph, C = phases.shape
    Cout = w9.shape[-1]
    has_sc = wsc is not None
    has_res = residual is not None

    kernel = functools.partial(
        _fused_conv_kernel, stride=stride, Ho=Ho, Wo=Wo, Hin=Hin, Win=Win,
        has_sc=has_sc, has_res=has_res, pad_out=pad_out, emit_stats=emit_stats)

    in_specs = [
        pl.BlockSpec((1, C), lambda n: (0, 0)),
        pl.BlockSpec((1, C), lambda n: (0, 0)),
        pl.BlockSpec((1, s2, Hph, Wph, C), lambda n: (n, 0, 0, 0, 0)),
        pl.BlockSpec((9, C, Cout), lambda n: (0, 0, 0)),
    ]
    args = [mean, inv, phases, w9]
    if has_sc:
        in_specs.append(pl.BlockSpec((C, Cout), lambda n: (0, 0)))
        args.append(wsc)
    if has_res:
        in_specs.append(pl.BlockSpec((1, Ho, Wo, Cout), lambda n: (n, 0, 0, 0)))
        args.append(residual)

    Hop = Ho + 2 if pad_out else Ho
    Wop = Wo + 2 if pad_out else Wo
    out_shapes = [jax.ShapeDtypeStruct((N, Hop, Wop, Cout), jnp.float32)]
    out_specs = [pl.BlockSpec((1, Hop, Wop, Cout), lambda n: (n, 0, 0, 0))]
    if has_sc:
        out_shapes.append(jax.ShapeDtypeStruct((N, Ho, Wo, Cout), jnp.float32))
        out_specs.append(pl.BlockSpec((1, Ho, Wo, Cout), lambda n: (n, 0, 0, 0)))
    if emit_stats:
        out_shapes.append(jax.ShapeDtypeStruct((N, 2, Cout), jnp.float32))
        out_specs.append(pl.BlockSpec((1, 2, Cout), lambda n: (n, 0, 0)))

    outs = pl.pallas_call(
        kernel,
        out_shape=tuple(out_shapes),
        grid=(N,),
        in_specs=in_specs,
        out_specs=tuple(out_specs),
        compiler_params=pltpu.CompilerParams(dimension_semantics=("parallel",)),
    )(*args)
    return outs


# --------------------------------------------------------------------------
# Plain-JAX glue: spatial pad + phase split (cheap, ~1x data, replaces 9x im2col)
# --------------------------------------------------------------------------
def _make_phases(x, stride):
    """Zero-pad spatially by 1 and split into stride*stride phase images:
    phases[n, ph*stride+pw, a, b, :] == padded(x)[n, a*stride+ph, b*stride+pw, :]."""
    N, H, W, C = x.shape
    s = stride
    if s == 1:
        return jnp.pad(x, ((0, 0), (1, 1), (1, 1), (0, 0)))[:, None]
    Hp, Wp = H + 2, W + 2
    Hph, Wph = -(-Hp // s), -(-Wp // s)
    xp = jnp.pad(x, ((0, 0), (1, s * Hph - Hp + 1), (1, s * Wph - Wp + 1), (0, 0)))
    xp = xp.reshape(N, Hph, s, Wph, s, C)
    return jnp.transpose(xp, (0, 2, 4, 1, 3, 5)).reshape(N, s * s, Hph, Wph, C)


def _pack_conv3x3(w, cin_pad, cout_pad):
    # PyTorch conv weight (Cout, Cin, 3, 3) -> (9, Cin_pad, Cout_pad) bf16, tap = kh*3+kw
    cout, cin, kh, kw = w.shape
    w = jnp.transpose(w, (2, 3, 1, 0)).reshape(kh * kw, cin, cout)
    w = jnp.pad(w, ((0, 0), (0, cin_pad - cin), (0, cout_pad - cout)))
    return w.astype(jnp.bfloat16)


def _pack_conv1x1(w, cin_pad, cout_pad):
    cout, cin, _, _ = w.shape
    w = jnp.transpose(w, (2, 3, 1, 0)).reshape(cin, cout)
    w = jnp.pad(w, ((0, cin_pad - cin), (0, cout_pad - cout)))
    return w.astype(jnp.bfloat16)


# --------------------------------------------------------------------------
# PreActBlock
# --------------------------------------------------------------------------
class PreActBlockPallas:
    expansion = 1

    def __init__(self, in_planes, planes, stride=1, *, key):
        self.in_planes, self.planes, self.stride = in_planes, planes, stride
        k1, k2, k3 = jax.random.split(key, 3)

        def init(k, cout, cin, kh, kw):
            fan_in = cin * kh * kw
            return jax.random.normal(k, (cout, cin, kh, kw), jnp.float32) * np.sqrt(
                2.0 / fan_in)

        self.w1 = init(k1, planes, in_planes, 3, 3)
        self.w2 = init(k2, planes, planes, 3, 3)
        self.has_shortcut = stride != 1 or in_planes != self.expansion * planes
        self.w_sc = (init(k3, self.expansion * planes, in_planes, 1, 1)
                     if self.has_shortcut else None)

        # lane-padded (multiple of 128), bf16, MXU-ready weights packed once
        self.cin_pad = _round_up(in_planes, 128)
        self.planes_pad = _round_up(self.expansion * planes, 128)
        self.w1_p = _pack_conv3x3(self.w1, self.cin_pad, self.planes_pad)
        self.w2_p = _pack_conv3x3(self.w2, self.planes_pad, self.planes_pad)
        self.wsc_p = (_pack_conv1x1(self.w_sc, self.cin_pad, self.planes_pad)
                      if self.has_shortcut else None)

    def __call__(self, x_nchw):
        # layout: NCHW in/out (PyTorch convention), NHWC + lane-padded channels inside.
        x = jnp.transpose(x_nchw, (0, 2, 3, 1)).astype(jnp.float32)
        N, H, W, Cin = x.shape
        s = self.stride
        Ho = (H - 1) // s + 1
        Wo = (W - 1) // s + 1
        Cp, Pp = self.cin_pad, self.planes_pad

        xpadc = jnp.pad(x, ((0, 0), (0, 0), (0, 0), (0, Cp - Cin)))

        # BN1 statistics (row-tiled reduction kernel over the input)
        mean1, inv1 = bn_stats(xpadc.reshape(N * H * W, Cp))

        # conv1 (3x3, stride, pad=1) fused with BN1+ReLU prologue, optional 1x1
        # shortcut, spatially-padded output, and BN2 partial statistics.
        ph1 = _make_phases(xpadc, s)
        if self.has_shortcut:
            o1p, sc, st2 = fused_conv(
                ph1, self.w1_p, mean1, inv1, stride=s,
                Ho=Ho, Wo=Wo, Hin=H, Win=W, wsc=self.wsc_p,
                pad_out=True, emit_stats=True)
        else:
            o1p, st2 = fused_conv(
                ph1, self.w1_p, mean1, inv1, stride=s,
                Ho=Ho, Wo=Wo, Hin=H, Win=W,
                pad_out=True, emit_stats=True)
            sc = xpadc  # identity shortcut (stride 1, in_planes == planes)

        # BN2 statistics: reduce the per-batch partial sums (tiny), no extra HBM pass.
        mean2, inv2 = _finalize_stats(jnp.sum(st2, axis=0), N * Ho * Wo)

        # conv2 (3x3, stride 1, pad 1) with fused BN2+ReLU prologue and residual add.
        # o1p already carries its zero halo ring -> free reshape, no pad/copy pass.
        ph2 = o1p.reshape(N, 1, Ho + 2, Wo + 2, Pp)
        (out,) = fused_conv(ph2, self.w2_p, mean2, inv2, stride=1,
                            Ho=Ho, Wo=Wo, Hin=Ho, Win=Wo, residual=sc)

        out = out[..., :self.planes]
        return jnp.transpose(out, (0, 3, 1, 2))


# --------------------------------------------------------------------------
# Pure-JAX reference (for a correctness sanity check)
# --------------------------------------------------------------------------
def ref_forward(block, x_nchw):
    eps = 1e-5

    def bn(x):
        mean = jnp.mean(x, axis=(0, 2, 3), keepdims=True)
        var = jnp.mean((x - mean) ** 2, axis=(0, 2, 3), keepdims=True)
        return (x - mean) / jnp.sqrt(var + eps)

    def conv(x, w, stride, pad):
        return jax.lax.conv_general_dilated(
            x, w, (stride, stride), ((pad, pad), (pad, pad)),
            dimension_numbers=("NCHW", "OIHW", "NCHW"),
            precision=jax.lax.Precision.HIGHEST,
        )

    out = jax.nn.relu(bn(x_nchw))
    sc = conv(out, block.w_sc, block.stride, 0) if block.has_shortcut else x_nchw
    o = conv(out, block.w1, block.stride, 1)
    o = conv(jax.nn.relu(bn(o)), block.w2, 1, 1)
    return o + sc


if __name__ == "__main__":
    key = jax.random.PRNGKey(0)
    kx1, kp1, kx2, kp2 = jax.random.split(key, 4)

    # Config 1: strided block with 1x1 conv shortcut.
    N, Cin, H, W = 2, 4, 16, 16
    planes, stride = 8, 2
    x1 = jax.random.normal(kx1, (N, Cin, H, W), jnp.float32)
    blk1 = PreActBlockPallas(Cin, planes, stride, key=kp1)
    y1 = jax.block_until_ready(blk1(x1))
    assert y1.shape == (N, planes, H // stride, W // stride), y1.shape
    y1_ref = jax.block_until_ready(ref_forward(blk1, x1))
    # bf16 MXU inputs with f32 accumulation -> slightly looser tolerance than f32
    np.testing.assert_allclose(np.asarray(y1), np.asarray(y1_ref), atol=3e-2, rtol=3e-2)

    # Config 2: identity shortcut (stride 1, in_planes == planes).
    N2, C2, H2, W2 = 2, 8, 16, 16
    x2 = jax.random.normal(kx2, (N2, C2, H2, W2), jnp.float32)
    blk2 = PreActBlockPallas(C2, C2, 1, key=kp2)
    y2 = jax.block_until_ready(blk2(x2))
    assert y2.shape == (N2, C2, H2, W2), y2.shape
    y2_ref = jax.block_until_ready(ref_forward(blk2, x2))
    np.testing.assert_allclose(np.asarray(y2), np.asarray(y2_ref), atol=3e-2, rtol=3e-2)

    print("KERNEL_OK")
</pallas_src>

<mosaic_0001>
module attributes {stable_mosaic.version = 11 : i64} {
  func.func @_bn_stats_kernel(%arg0: i32, %arg1: memref<512x128xf32, #tpu.memory_space<vmem>>, %arg2: memref<2x128xf32, #tpu.memory_space<vmem>>) attributes {dimension_semantics = [#tpu.dimension_semantics<arbitrary>], iteration_bounds = array<i64: 1>, scalar_prefetch = 0 : i64, scratch_operands = 0 : i64, tpu.core_type = #tpu.core_type<tc>, window_params = [{transform_indices = @transform_0, window_bounds = array<i64: 512, 128>}, {pipeline_mode = #tpu.pipeline_mode<synchronous>, transform_indices = @transform_1, window_bounds = array<i64: 2, 128>}]} {
    %c0_i32 = arith.constant 0 : i32
    %0 = arith.cmpi eq, %arg0, %c0_i32 : i32
    %1 = arith.extui %0 : i1 to i32
    %c0_i32_0 = arith.constant 0 : i32
    %2 = arith.cmpi ne, %1, %c0_i32_0 : i32
    scf.if %2 {
      %cst_7 = arith.constant 0.000000e+00 : f32
      %13 = vector.broadcast %cst_7 : f32 to vector<2x128xf32>
      %c0_8 = arith.constant 0 : index
      %c0_9 = arith.constant 0 : index
      %14 = vector.load %arg2[%c0_8, %c0_9] : memref<2x128xf32, #tpu.memory_space<vmem>>, vector<2x128xf32>
      tpu.vector_store %arg2[%c0_8, %c0_9], %13 {strides = array<i32>} : memref<2x128xf32, #tpu.memory_space<vmem>>, vector<2x128xf32>,
    } else {
    }
    %c0 = arith.constant 0 : index
    %c0_1 = arith.constant 0 : index
    %3 = vector.load %arg1[%c0, %c0_1] : memref<512x128xf32, #tpu.memory_space<vmem>>, vector<512x128xf32>
    %c0_2 = arith.constant 0 : index
    %c0_3 = arith.constant 0 : index
    %4 = vector.load %arg2[%c0_2, %c0_3] : memref<2x128xf32, #tpu.memory_space<vmem>>, vector<2x128xf32>
    %cst = arith.constant dense<0.000000e+00> : vector<128xf32>
    %5 = vector.multi_reduction <add>, %3, %cst [0] : vector<512x128xf32> to vector<128xf32>
    %6 = vector.shape_cast %5 : vector<128xf32> to vector<1x128xf32>
    %7 = arith.mulf %3, %3 : vector<512x128xf32>
    %cst_4 = arith.constant dense<0.000000e+00> : vector<128xf32>
    %8 = vector.multi_reduction <add>, %7, %cst_4 [0] : vector<512x128xf32> to vector<128xf32>
    %9 = vector.shape_cast %8 : vector<128xf32> to vector<1x128xf32>
    %10 = tpu.concatenate %6, %9 in 0 : vector<1x128xf32>, vector<1x128xf32> -> vector<2x128xf32>
    %11 = arith.addf %4, %10 : vector<2x128xf32>
    %c0_5 = arith.constant 0 : index
    %c0_6 = arith.constant 0 : index
    %12 = vector.load %arg2[%c0_5, %c0_6] : memref<2x128xf32, #tpu.memory_space<vmem>>, vector<2x128xf32>
    tpu.vector_store %arg2[%c0_5, %c0_6], %11 {strides = array<i32>} : memref<2x128xf32, #tpu.memory_space<vmem>>, vector<2x128xf32>,
    return
  }
  func.func @transform_0(%arg0: i32) -> (i32, i32) {
    %c0_i32 = arith.constant 0 : i32
    %c0_i32_0 = arith.constant 0 : i32
    return %arg0, %c0_i32 : i32, i32
  }
  func.func @transform_1(%arg0: i32) -> (i32, i32) {
    %c0_i32 = arith.constant 0 : i32
    %c0_i32_0 = arith.constant 0 : i32
    %c0_i32_1 = arith.constant 0 : i32
    return %c0_i32, %c0_i32_0 : i32, i32
  }
}

</mosaic_0001>

<bundles_post_ra>
// kernel: tpu_custom_call.1
= control target key start
LH: loop header
LB: loop body
LE: loop exit
PB: predicated region body
PF: predicated region fallthrough
CT: control target
= control target key end

     0   :  { %6 = vsyncpa [#allocation3], 0  ;;  %s384_s0 = inlined_call_operand.hbm [shape: f32[512,128], index: 0, kind: input, shape index: {}]   ;;  %s385_s1 = inlined_call_operand.hbm [shape: f32[2,128], index: 1, kind: output, shape index: {}]  }
   0x1   :  { %7 = vsyncpa [#allocation4], 0  ;;  %s363_s6 = smov [#allocation2]  }
   0x2   :  { %s13_s7 = sshll.u32 %s363_s6, 4  ;;  %s14_s7 = int_to_ptr.vmem [resolvable:$true] %s13_s7 }
   0x3   :  { %s327_s8 = scalar_lea.vmem %s14_s7, 8192  ;;  %p332_p1 = scmp.lt.s32.totalorder %s14_s7, %s14_s7 }
   0x4   :  { %p328_p0 = scmp.ne.s32.totalorder %s14_s7, %s327_s8  ;;  %p333_p2 = scmp.lt.s32.totalorder %s327_s8, %s327_s8 }
   0x6   :  { %p334_p3 = por %p333_p2, %p332_p1 }
   0x8   :  { %p335_p4 = pnand %p334_p3, %p328_p0 }
   0xa   :  { %338 = shalt.err (!%p335_p4)
}
   0xb   :  { %s364_s9 = smov 128   ;;  %s365_s10 = smov 8  }
   0xc   :  { %19 = dma.hbm_to_vmem [thread:$0]  %s384_s0, 8192, %s14_s7, [#allocation3], %s364_s9, %s364_s9, %s365_s10  }
   0xd   :  { %359 = dma.done.wait [#allocation3], 8192  }
   0xe   :  { %360 = vsyncadd [#allocation3], 4294959104  ;;  %v366_v0 = vmov 0.0   ;;  %v28_v1 = vld [vmem:[#allocation2] sm:$0xff]  ;;  %v29_v2 = vld [vmem:[#allocation2 + $0x8] sm:$0xff]  ;;  %vm295_vm0 = vcmask 1040384  }
   0xf   :  { %27 = vst [vmem:[#allocation5] sm:$0x3] %v366_v0  ;;  %v30_v3 = vld [vmem:[#allocation2 + $0x10] sm:$0xff]  ;;  %v31_v4 = vld [vmem:[#allocation2 + $0x18] sm:$0xff]  ;;  %v93_v5 = vadd.f32 %v29_v2, %v28_v1  ;;  %v162_v6 = vmul.f32 %v28_v1, %v28_v1  ;;  %v163_v7 = vmul.f32 %v29_v2, %v29_v2  ;;  %v32_v9 = vld [vmem:[#allocation2 + $0x20] sm:$0xff]  ;;  %s367_s0 = smov [#allocation5]  }
  0x10   :  { %v164_v8 = vmul.f32 %v30_v3, %v30_v3  ;;  %v165_v11 = vmul.f32 %v31_v4, %v31_v4  ;;  %v33_v13 = vld [vmem:[#allocation2 + $0x28] sm:$0xff]  ;;  %v166_v15 = vmul.f32 %v32_v9, %v32_v9  ;;  %v34_v17 = vld [vmem:[#allocation2 + $0x30] sm:$0xff]  ;;  %v35_v21 = vld [vmem:[#allocation2 + $0x38] sm:$0xff]  ;;  %s305_s13 = sshll.u32 %s367_s0, 4  ;;  %s306_s13 = int_to_ptr.vmem [resolvable:$true] %s305_s13 }
  0x11   :  { %v94_v10 = vadd.f32 %v93_v5, %v30_v3  ;;  %v226_v12 = vadd.f32 %v163_v7, %v162_v6  ;;  %v167_v19 = vmul.f32 %v33_v13, %v33_v13  ;;  %v168_v23 = vmul.f32 %v34_v17, %v34_v17  ;;  %v36_v25 = vld [vmem:[#allocation2 + $0x40] sm:$0xff]  ;;  %v37_v29 = vld [vmem:[#allocation2 + $0x48] sm:$0xff]  ;;  %v38_v33 = vld [vmem:[#allocation2 + $0x50] sm:$0xff]  ;;  %s339_s14 = scalar_lea.vmem %s306_s13, 32  ;;  %p344_p6 = scmp.lt.s32.totalorder %s306_s13, %s306_s13 }
  0x12   :  { %v169_v27 = vmul.f32 %v35_v21, %v35_v21  ;;  %v170_v31 = vmul.f32 %v36_v25, %v36_v25  ;;  %v171_v35 = vmul.f32 %v37_v29, %v37_v29  ;;  %v39_v37 = vld [vmem:[#allocation2 + $0x58] sm:$0xff]  ;;  %v172_v39 = vmul.f32 %v38_v33, %v38_v33  ;;  %v40_v41 = vld [vmem:[#allocation2 + $0x60] sm:$0xff]  ;;  %v41_v45 = vld [vmem:[#allocation2 + $0x68] sm:$0xff]  ;;  %p340_p5 = scmp.ne.s32.totalorder %s306_s13, %s339_s14  ;;  %p345_p7 = scmp.lt.s32.totalorder %s339_s14, %s339_s14 }
  0x13   :  { %v95_v14 = vadd.f32 %v94_v10, %v31_v4  ;;  %v227_v16 = vadd.f32 %v226_v12, %v164_v8  ;;  %v173_v43 = vmul.f32 %v39_v37, %v39_v37  ;;  %v174_v47 = vmul.f32 %v40_v41, %v40_v41  ;;  %v42_v49 = vld [vmem:[#allocation2 + $0x70] sm:$0xff]  ;;  %v43_v53 = vld [vmem:[#allocation2 + $0x78] sm:$0xff]  ;;  %v44_v57 = vld [vmem:[#allocation2 + $0x80] sm:$0xff] }
  0x14   :  { %v175_v51 = vmul.f32 %v41_v45, %v41_v45  ;;  %v176_v55 = vmul.f32 %v42_v49, %v42_v49  ;;  %v177_v59 = vmul.f32 %v43_v53, %v43_v53  ;;  %v45_v61 = vld [vmem:[#allocation2 + $0x88] sm:$0xff]  ;;  %v178_v63 = vmul.f32 %v44_v57, %v44_v57  ;;  %v46_v1 = vld [vmem:[#allocation2 + $0x90] sm:$0xff]  ;;  %v47_v5 = vld [vmem:[#allocation2 + $0x98] sm:$0xff]  ;;  %p346_p8 = por %p345_p7, %p344_p6 }
  0x15   :  { %v96_v18 = vadd.f32 %v95_v14, %v32_v9  ;;  %v228_v20 = vadd.f32 %v227_v16, %v165_v11  ;;  %v179_v3 = vmul.f32 %v45_v61, %v45_v61  ;;  %v180_v7 = vmul.f32 %v46_v1, %v46_v1  ;;  %v48_v9 = vld [vmem:[#allocation2 + $0xa0] sm:$0xff] }
  0x16   :  { %v181_v11 = vmul.f32 %v47_v5, %v47_v5  ;;  %p347_p9 = pnand %p346_p8, %p340_p5 }
  0x17   :  { %v97_v22 = vadd.f32 %v96_v18, %v33_v13  ;;  %v229_v24 = vadd.f32 %v228_v20, %v166_v15  ;;  %v49_v13 = vld [vmem:[#allocation2 + $0xa8] sm:$0xff]  ;;  %v182_v15 = vmul.f32 %v48_v9, %v48_v9 }
  0x19   :  { %v98_v26 = vadd.f32 %v97_v22, %v34_v17  ;;  %v230_v28 = vadd.f32 %v229_v24, %v167_v19  ;;  %v50_v17 = vld [vmem:[#allocation2 + $0xb0] sm:$0xff]  ;;  %v183_v19 = vmul.f32 %v49_v13, %v49_v13 }
  0x1b   :  { %v99_v30 = vadd.f32 %v98_v26, %v35_v21  ;;  %v231_v32 = vadd.f32 %v230_v28, %v168_v23  ;;  %v51_v21 = vld [vmem:[#allocation2 + $0xb8] sm:$0xff]  ;;  %v184_v23 = vmul.f32 %v50_v17, %v50_v17 }
  0x1d   :  { %v100_v34 = vadd.f32 %v99_v30, %v36_v25  ;;  %v232_v36 = vadd.f32 %v231_v32, %v169_v27  ;;  %v52_v25 = vld [vmem:[#allocation2 + $0xc0] sm:$0xff]  ;;  %v185_v27 = vmul.f32 %v51_v21, %v51_v21 }
  0x1f   :  { %v101_v38 = vadd.f32 %v100_v34, %v37_v29  ;;  %v233_v40 = vadd.f32 %v232_v36, %v170_v31  ;;  %v53_v29 = vld [vmem:[#allocation2 + $0xc8] sm:$0xff]  ;;  %v186_v31 = vmul.f32 %v52_v25, %v52_v25 }
  0x21   :  { %v102_v42 = vadd.f32 %v101_v38, %v38_v33  ;;  %v234_v44 = vadd.f32 %v233_v40, %v171_v35  ;;  %v54_v33 = vld [vmem:[#allocation2 + $0xd0] sm:$0xff]  ;;  %v187_v35 = vmul.f32 %v53_v29, %v53_v29 }
  0x23   :  { %v103_v46 = vadd.f32 %v102_v42, %v39_v37  ;;  %v235_v48 = vadd.f32 %v234_v44, %v172_v39  ;;  %v55_v37 = vld [vmem:[#allocation2 + $0xd8] sm:$0xff]  ;;  %v188_v39 = vmul.f32 %v54_v33, %v54_v33 }
  0x25   :  { %v104_v50 = vadd.f32 %v103_v46, %v40_v41  ;;  %v236_v52 = vadd.f32 %v235_v48, %v173_v43  ;;  %v56_v41 = vld [vmem:[#allocation2 + $0xe0] sm:$0xff]  ;;  %v189_v43 = vmul.f32 %v55_v37, %v55_v37 }
  0x27   :  { %v105_v54 = vadd.f32 %v104_v50, %v41_v45  ;;  %v237_v56 = vadd.f32 %v236_v52, %v174_v47  ;;  %v57_v45 = vld [vmem:[#allocation2 + $0xe8] sm:$0xff]  ;;  %v190_v47 = vmul.f32 %v56_v41, %v56_v41 }
  0x29   :  { %v106_v58 = vadd.f32 %v105_v54, %v42_v49  ;;  %v238_v60 = vadd.f32 %v237_v56, %v175_v51  ;;  %v58_v49 = vld [vmem:[#allocation2 + $0xf0] sm:$0xff]  ;;  %v191_v51 = vmul.f32 %v57_v45, %v57_v45 }
  0x2b   :  { %v107_v62 = vadd.f32 %v106_v58, %v43_v53  ;;  %v239_v0 = vadd.f32 %v238_v60, %v176_v55  ;;  %v59_v53 = vld [vmem:[#allocation2 + $0xf8] sm:$0xff]  ;;  %v192_v55 = vmul.f32 %v58_v49, %v58_v49 }
  0x2d   :  { %v108_v2 = vadd.f32 %v107_v62, %v44_v57  ;;  %v240_v4 = vadd.f32 %v239_v0, %v177_v59  ;;  %v60_v57 = vld [vmem:[#allocation2 + $0x100] sm:$0xff]  ;;  %v193_v59 = vmul.f32 %v59_v53, %v59_v53 }
  0x2f   :  { %v109_v6 = vadd.f32 %v108_v2, %v45_v61  ;;  %v241_v8 = vadd.f32 %v240_v4, %v178_v63  ;;  %v61_v61 = vld [vmem:[#allocation2 + $0x108] sm:$0xff]  ;;  %v194_v63 = vmul.f32 %v60_v57, %v60_v57 }
  0x31   :  { %v110_v10 = vadd.f32 %v109_v6, %v46_v1  ;;  %v242_v12 = vadd.f32 %v241_v8, %v179_v3  ;;  %v62_v1 = vld [vmem:[#allocation2 + $0x110] sm:$0xff]  ;;  %v195_v3 = vmul.f32 %v61_v61, %v61_v61 }
  0x33   :  { %v111_v14 = vadd.f32 %v110_v10, %v47_v5  ;;  %v243_v16 = vadd.f32 %v242_v12, %v180_v7  ;;  %v63_v5 = vld [vmem:[#allocation2 + $0x118] sm:$0xff]  ;;  %v196_v7 = vmul.f32 %v62_v1, %v62_v1 }
  0x35   :  { %v112_v18 = vadd.f32 %v111_v14, %v48_v9  ;;  %v244_v20 = vadd.f32 %v243_v16, %v181_v11  ;;  %v64_v9 = vld [vmem:[#allocation2 + $0x120] sm:$0xff]  ;;  %v197_v11 = vmul.f32 %v63_v5, %v63_v5 }
  0x37   :  { %v113_v22 = vadd.f32 %v112_v18, %v49_v13  ;;  %v245_v24 = vadd.f32 %v244_v20, %v182_v15  ;;  %v65_v13 = vld [vmem:[#allocation2 + $0x128] sm:$0xff]  ;;  %v198_v15 = vmul.f32 %v64_v9, %v64_v9 }
  0x39   :  { %v114_v26 = vadd.f32 %v113_v22, %v50_v17  ;;  %v246_v28 = vadd.f32 %v245_v24, %v183_v19  ;;  %v66_v17 = vld [vmem:[#allocation2 + $0x130] sm:$0xff]  ;;  %v199_v19 = vmul.f32 %v65_v13, %v65_v13 }
  0x3b   :  { %v115_v30 = vadd.f32 %v114_v26, %v51_v21  ;;  %v247_v32 = vadd.f32 %v246_v28, %v184_v23  ;;  %v67_v21 = vld [vmem:[#allocation2 + $0x138] sm:$0xff]  ;;  %v200_v23 = vmul.f32 %v66_v17, %v66_v17 }
  0x3d   :  { %v116_v34 = vadd.f32 %v115_v30, %v52_v25  ;;  %v248_v36 = vadd.f32 %v247_v32, %v185_v27  ;;  %v68_v25 = vld [vmem:[#allocation2 + $0x140] sm:$0xff]  ;;  %v201_v27 = vmul.f32 %v67_v21, %v67_v21 }
  0x3f   :  { %v117_v38 = vadd.f32 %v116_v34, %v53_v29  ;;  %v249_v40 = vadd.f32 %v248_v36, %v186_v31  ;;  %v69_v29 = vld [vmem:[#allocation2 + $0x148] sm:$0xff]  ;;  %v202_v31 = vmul.f32 %v68_v25, %v68_v25 }
  0x41   :  { %v118_v42 = vadd.f32 %v117_v38, %v54_v33  ;;  %v250_v44 = vadd.f32 %v249_v40, %v187_v35  ;;  %v70_v33 = vld [vmem:[#allocation2 + $0x150] sm:$0xff]  ;;  %v203_v35 = vmul.f32 %v69_v29, %v69_v29 }
  0x43   :  { %v119_v46 = vadd.f32 %v118_v42, %v55_v37  ;;  %v251_v48 = vadd.f32 %v250_v44, %v188_v39  ;;  %v71_v37 = vld [vmem:[#allocation2 + $0x158] sm:$0xff]  ;;  %v204_v39 = vmul.f32 %v70_v33, %v70_v33 }
  0x45   :  { %v120_v50 = vadd.f32 %v119_v46, %v56_v41  ;;  %v252_v52 = vadd.f32 %v251_v48, %v189_v43  ;;  %v72_v41 = vld [vmem:[#allocation2 + $0x160] sm:$0xff]  ;;  %v205_v43 = vmul.f32 %v71_v37, %v71_v37 }
  0x47   :  { %v121_v54 = vadd.f32 %v120_v50, %v57_v45  ;;  %v253_v56 = vadd.f32 %v252_v52, %v190_v47  ;;  %v73_v45 = vld [vmem:[#allocation2 + $0x168] sm:$0xff]  ;;  %v206_v47 = vmul.f32 %v72_v41, %v72_v41 }
  0x49   :  { %v122_v58 = vadd.f32 %v121_v54, %v58_v49  ;;  %v254_v60 = vadd.f32 %v253_v56, %v191_v51  ;;  %v74_v49 = vld [vmem:[#allocation2 + $0x170] sm:$0xff]  ;;  %v207_v51 = vmul.f32 %v73_v45, %v73_v45 }
  0x4b   :  { %v123_v62 = vadd.f32 %v122_v58, %v59_v53  ;;  %v255_v0 = vadd.f32 %v254_v60, %v192_v55  ;;  %v75_v53 = vld [vmem:[#allocation2 + $0x178] sm:$0xff]  ;;  %v208_v55 = vmul.f32 %v74_v49, %v74_v49 }
  0x4d   :  { %v124_v2 = vadd.f32 %v123_v62, %v60_v57  ;;  %v256_v4 = vadd.f32 %v255_v0, %v193_v59  ;;  %v76_v57 = vld [vmem:[#allocation2 + $0x180] sm:$0xff]  ;;  %v209_v59 = vmul.f32 %v75_v53, %v75_v53 }
  0x4f   :  { %v125_v6 = vadd.f32 %v124_v2, %v61_v61  ;;  %v257_v8 = vadd.f32 %v256_v4, %v194_v63  ;;  %v77_v61 = vld [vmem:[#allocation2 + $0x188] sm:$0xff]  ;;  %v210_v63 = vmul.f32 %v76_v57, %v76_v57 }
  0x51   :  { %v126_v10 = vadd.f32 %v125_v6, %v62_v1  ;;  %v258_v12 = vadd.f32 %v257_v8, %v195_v3  ;;  %v78_v1 = vld [vmem:[#allocation2 + $0x190] sm:$0xff]  ;;  %v211_v3 = vmul.f32 %v77_v61, %v77_v61 }
  0x53   :  { %v127_v14 = vadd.f32 %v126_v10, %v63_v5  ;;  %v259_v16 = vadd.f32 %v258_v12, %v196_v7  ;;  %v79_v5 = vld [vmem:[#allocation2 + $0x198] sm:$0xff]  ;;  %v212_v7 = vmul.f32 %v78_v1, %v78_v1 }
  0x55   :  { %v128_v18 = vadd.f32 %v127_v14, %v64_v9  ;;  %v260_v20 = vadd.f32 %v259_v16, %v197_v11  ;;  %v80_v9 = vld [vmem:[#allocation2 + $0x1a0] sm:$0xff]  ;;  %v213_v11 = vmul.f32 %v79_v5, %v79_v5 }
  0x57   :  { %v129_v22 = vadd.f32 %v128_v18, %v65_v13  ;;  %v261_v24 = vadd.f32 %v260_v20, %v198_v15  ;;  %v81_v13 = vld [vmem:[#allocation2 + $0x1a8] sm:$0xff]  ;;  %v214_v15 = vmul.f32 %v80_v9, %v80_v9 }
  0x59   :  { %v130_v26 = vadd.f32 %v129_v22, %v66_v17  ;;  %v262_v28 = vadd.f32 %v261_v24, %v199_v19  ;;  %v82_v17 = vld [vmem:[#allocation2 + $0x1b0] sm:$0xff]  ;;  %v215_v19 = vmul.f32 %v81_v13, %v81_v13 }
  0x5b   :  { %v131_v30 = vadd.f32 %v130_v26, %v67_v21  ;;  %v263_v32 = vadd.f32 %v262_v28, %v200_v23  ;;  %v83_v21 = vld [vmem:[#allocation2 + $0x1b8] sm:$0xff]  ;;  %v216_v23 = vmul.f32 %v82_v17, %v82_v17 }
  0x5d   :  { %v132_v34 = vadd.f32 %v131_v30, %v68_v25  ;;  %v264_v36 = vadd.f32 %v263_v32, %v201_v27  ;;  %v84_v25 = vld [vmem:[#allocation2 + $0x1c0] sm:$0xff]  ;;  %v217_v27 = vmul.f32 %v83_v21, %v83_v21 }
  0x5f   :  { %v133_v38 = vadd.f32 %v132_v34, %v69_v29  ;;  %v265_v40 = vadd.f32 %v264_v36, %v202_v31  ;;  %v85_v29 = vld [vmem:[#allocation2 + $0x1c8] sm:$0xff]  ;;  %v218_v31 = vmul.f32 %v84_v25, %v84_v25 }
  0x61   :  { %v134_v42 = vadd.f32 %v133_v38, %v70_v33  ;;  %v266_v44 = vadd.f32 %v265_v40, %v203_v35  ;;  %v86_v33 = vld [vmem:[#allocation2 + $0x1d0] sm:$0xff]  ;;  %v219_v35 = vmul.f32 %v85_v29, %v85_v29 }
  0x63   :  { %v135_v46 = vadd.f32 %v134_v42, %v71_v37  ;;  %v267_v48 = vadd.f32 %v266_v44, %v204_v39  ;;  %v87_v37 = vld [vmem:[#allocation2 + $0x1d8] sm:$0xff]  ;;  %v220_v39 = vmul.f32 %v86_v33, %v86_v33 }
  0x65   :  { %v136_v50 = vadd.f32 %v135_v46, %v72_v41  ;;  %v268_v52 = vadd.f32 %v267_v48, %v205_v43  ;;  %v88_v41 = vld [vmem:[#allocation2 + $0x1e0] sm:$0xff]  ;;  %v221_v43 = vmul.f32 %v87_v37, %v87_v37 }
  0x67   :  { %v137_v54 = vadd.f32 %v136_v50, %v73_v45  ;;  %v269_v56 = vadd.f32 %v268_v52, %v206_v47  ;;  %v89_v45 = vld [vmem:[#allocation2 + $0x1e8] sm:$0xff]  ;;  %v222_v47 = vmul.f32 %v88_v41, %v88_v41 }
  0x69   :  { %v138_v58 = vadd.f32 %v137_v54, %v74_v49  ;;  %v270_v60 = vadd.f32 %v269_v56, %v207_v51  ;;  %v90_v49 = vld [vmem:[#allocation2 + $0x1f0] sm:$0xff]  ;;  %v223_v51 = vmul.f32 %v89_v45, %v89_v45 }
  0x6b   :  { %v139_v62 = vadd.f32 %v138_v58, %v75_v53  ;;  %v271_v0 = vadd.f32 %v270_v60, %v208_v55  ;;  %v91_v53 = vld [vmem:[#allocation2 + $0x1f8] sm:$0xff]  ;;  %v224_v55 = vmul.f32 %v90_v49, %v90_v49 }
  0x6c   :  { %v225_v58 = vmul.f32 %v91_v53, %v91_v53 }
  0x6d   :  { %v140_v2 = vadd.f32 %v139_v62, %v76_v57  ;;  %v272_v4 = vadd.f32 %v271_v0, %v209_v59 }
  0x6f   :  { %v141_v6 = vadd.f32 %v140_v2, %v77_v61  ;;  %v273_v8 = vadd.f32 %v272_v4, %v210_v63 }
  0x71   :  { %v142_v10 = vadd.f32 %v141_v6, %v78_v1  ;;  %v274_v12 = vadd.f32 %v273_v8, %v211_v3 }
  0x73   :  { %v143_v14 = vadd.f32 %v142_v10, %v79_v5  ;;  %v275_v16 = vadd.f32 %v274_v12, %v212_v7  ;;  %v92_v10 = vld [vmem:[#allocation5] sm:$0x3] }
  0x75   :  { %v144_v18 = vadd.f32 %v143_v14, %v80_v9  ;;  %v276_v20 = vadd.f32 %v275_v16, %v213_v11 }
  0x77   :  { %v145_v22 = vadd.f32 %v144_v18, %v81_v13  ;;  %v277_v24 = vadd.f32 %v276_v20, %v214_v15 }
  0x79   :  { %v146_v26 = vadd.f32 %v145_v22, %v82_v17  ;;  %v278_v28 = vadd.f32 %v277_v24, %v215_v19 }
  0x7b   :  { %v147_v30 = vadd.f32 %v146_v26, %v83_v21  ;;  %v279_v32 = vadd.f32 %v278_v28, %v216_v23 }
  0x7d   :  { %v148_v34 = vadd.f32 %v147_v30, %v84_v25  ;;  %v280_v36 = vadd.f32 %v279_v32, %v217_v27 }
  0x7f   :  { %v149_v38 = vadd.f32 %v148_v34, %v85_v29  ;;  %v281_v40 = vadd.f32 %v280_v36, %v218_v31 }
  0x81   :  { %v150_v42 = vadd.f32 %v149_v38, %v86_v33  ;;  %v282_v44 = vadd.f32 %v281_v40, %v219_v35 }
  0x83   :  { %v151_v46 = vadd.f32 %v150_v42, %v87_v37  ;;  %v283_v48 = vadd.f32 %v282_v44, %v220_v39 }
  0x85   :  { %v152_v50 = vadd.f32 %v151_v46, %v88_v41  ;;  %v284_v52 = vadd.f32 %v283_v48, %v221_v43 }
  0x87   :  { %v153_v54 = vadd.f32 %v152_v50, %v89_v45  ;;  %v285_v56 = vadd.f32 %v284_v52, %v222_v47 }
  0x89   :  { %v154_v57 = vadd.f32 %v153_v54, %v90_v49  ;;  %v286_v59 = vadd.f32 %v285_v56, %v223_v51 }
  0x8b   :  { %v155_v60 = vadd.f32 %v154_v57, %v91_v53  ;;  %v287_v61 = vadd.f32 %v286_v59, %v224_v55 }
  0x8d   :  { %v156_v62 = vrot.slane %v155_v60, 4  ;;  %v288_v63 = vadd.f32 %v287_v61, %v225_v58 }
  0x8f   :  { %v157_v0 = vadd.f32 %v156_v62, %v155_v60  ;;  %v289_v1 = vrot.slane %v288_v63, 4 }
  0x91   :  { %v158_v2 = vrot.slane %v157_v0, 2  ;;  %v290_v3 = vadd.f32 %v289_v1, %v288_v63 }
  0x93   :  { %v159_v4 = vadd.f32 %v158_v2, %v157_v0  ;;  %v291_v5 = vrot.slane %v290_v3, 2 }
  0x95   :  { %v160_v6 = vrot.slane %v159_v4, 1  ;;  %v292_v7 = vadd.f32 %v291_v5, %v290_v3 }
  0x97   :  { %v161_v8 = vadd.f32 %v160_v6, %v159_v4  ;;  %v293_v9 = vrot.slane %v292_v7, 1 }
  0x99   :  { %v294_v11 = vadd.f32 %v293_v9, %v292_v7 }
  0x9b   :  { %v296_v12 = vsel %vm295_vm0, %v161_v8, %v294_v11 }
  0x9c   :  { %v297_v13 = vadd.f32 %v296_v12, %v92_v10 }
  0x9e   :  { %298 = vst [vmem:[#allocation5] sm:$0x3] %v297_v13 }
  0x9f   :  { %350 = shalt.err (!%p347_p9)
}
  0xa0   :  { %308 = dma.vmem_to_hbm [thread:$0]  %s306_s13, 32, %s385_s1, [#allocation4]  }
  0xa1   :  { %361 = dma.done.wait [#allocation4], 32  }
  0xa2   :  { %362 = vsyncadd [#allocation4], 4294967264 }
  0xa3   :  { %312 = vsyncpa [#allocation3], 1 }
  0xa4   :  { %313 = vsyncpa [#allocation4], 1 }

</bundles_post_ra>
